<compile_context>
chip_gen: v6e
topology: v6e:2x2x1
jax: 0.10.0
libtpu: 0.0.40
codegen_flags: <defaults>
</compile_context>

<pallas_src>
import functools

import numpy as np
import jax
import jax.numpy as jnp
from jax.experimental import pallas as pl
from jax.experimental.pallas import tpu as pltpu

_LANE = 128
_COMPUTE_DTYPE = jnp.bfloat16            # MXU-native inputs; accumulation stays f32.
_VMEM_LIMIT_BYTES = 32 * 1024 * 1024     # explicit scoped-VMEM limit (v5e default ~16 MiB).
_RESIDENT_A_BUDGET = 12 * 1024 * 1024    # cap for double-buffered (tm, K) resident LHS.


# ---------------------------------------------------------------------------
# Tiling helpers
# ---------------------------------------------------------------------------
def _round_up(x, m):
    return ((x + m - 1) // m) * m


def _pick_tm(m_pad):
    # Prefer >= 2 row-blocks (keeps both v7x TensorCores busy via the parallel
    # pair axis) while keeping tm >= 256 for arithmetic intensity when possible.
    for c in (512, 256):
        if m_pad % c == 0 and m_pad // c >= 2:
            return c
    for c in (512, 256, 128):
        if m_pad % c == 0:
            return c
    return m_pad  # unreachable: m_pad is a multiple of 128


def _pick_tk(k_pad):
    for c in (1024, 512, 256, 128):
        if k_pad % c == 0:
            return c
    return k_pad  # unreachable: k_pad is a multiple of 128


def _pad2d(x, rows, cols):
    r, c = x.shape
    if (r, c) == (rows, cols):
        return x
    return jnp.pad(x, ((0, rows - r), (0, cols - c)))


def _tri_pairs(gm):
    """Upper-triangular tile pairs (i <= j) plus MSE weights (1 diag, 2 off-diag)."""
    i_l, j_l, w_l = [], [], []
    for i in range(gm):
        for j in range(i, gm):
            i_l.append(i)
            j_l.append(j)
            w_l.append(1.0 if i == j else 2.0)
    return (np.asarray(i_l, np.int32), np.asarray(j_l, np.int32),
            np.asarray(w_l, np.float32))


def _prep(features):
    """Zero-pad to (M_pad, K_pad) multiples of 128, cast to bf16, pick tiles."""
    M, K = features.shape
    m_pad, k_pad = _round_up(M, _LANE), _round_up(K, _LANE)
    f = _pad2d(features.astype(_COMPUTE_DTYPE), m_pad, k_pad)
    tm, tk = _pick_tm(m_pad), _pick_tk(k_pad)
    gm, gk = m_pad // tm, k_pad // tk
    itemsize = jnp.dtype(_COMPUTE_DTYPE).itemsize
    a_resident = 2 * tm * k_pad * itemsize <= _RESIDENT_A_BUDGET
    return f, m_pad, k_pad, tm, tk, gm, gk, a_resident


def _input_specs(tm, tk, k_pad, a_resident):
    if a_resident:
        # Block index constant over (j, k): each LHS row-block is DMA'd once per i.
        a_spec = pl.BlockSpec((tm, k_pad), lambda t, k, it, jt: (it[t], 0))
    else:
        a_spec = pl.BlockSpec((tm, tk), lambda t, k, it, jt: (it[t], k))
    # RHS comes from the pre-transposed F^T -> plain (tm,tk)x(tk,tm) MXU contraction.
    b_spec = pl.BlockSpec((tk, tm), lambda t, k, it, jt: (k, jt[t]))
    return a_spec, b_spec


# ---------------------------------------------------------------------------
# Kernels
# ---------------------------------------------------------------------------
def _gram_kernel(it_ref, jt_ref, a_ref, bt_ref, g_ref, acc_ref,
                 *, inv_norm, tk, a_resident):
    k = pl.program_id(1)

    @pl.when(k == 0)
    def _():
        acc_ref[...] = jnp.zeros_like(acc_ref)

    if a_resident:
        start = pl.multiple_of(k * tk, tk)
        a = a_ref[:, pl.ds(start, tk)]
    else:
        a = a_ref[...]
    acc_ref[...] += jnp.dot(a, bt_ref[...], preferred_element_type=jnp.float32)

    @pl.when(k == pl.num_programs(1) - 1)
    def _():
        g_ref[...] = (acc_ref[...] * inv_norm).astype(g_ref.dtype)


def _gram_mse_kernel(it_ref, jt_ref, a_ref, bt_ref, t_ref, loss_ref, acc_ref,
                     *, inv_norm, tk, a_resident):
    # Loss-only variant: never materializes G in HBM.
    k = pl.program_id(1)

    @pl.when(k == 0)
    def _():
        acc_ref[...] = jnp.zeros_like(acc_ref)

    if a_resident:
        start = pl.multiple_of(k * tk, tk)
        a = a_ref[:, pl.ds(start, tk)]
    else:
        a = a_ref[...]
    acc_ref[...] += jnp.dot(a, bt_ref[...], preferred_element_type=jnp.float32)

    @pl.when(k == pl.num_programs(1) - 1)
    def _():
        diff = acc_ref[...] * inv_norm - t_ref[...]
        tile_sum = jnp.sum(diff * diff).reshape(1, 1, 1)
        loss_ref[...] = jnp.broadcast_to(tile_sum, loss_ref.shape)


# ---------------------------------------------------------------------------
# Wrappers
# ---------------------------------------------------------------------------
def gram_matrix(features, norm):
    """features: (M, K) -> G = features @ features.T / norm, shape (M, M) f32."""
    M, K = features.shape
    f, m_pad, k_pad, tm, tk, gm, gk, a_resident = _prep(features)
    f_t = f.T  # one-time HBM transpose (O(M*K), negligible vs O(M^2*K) matmul)
    i_np, j_np, _ = _tri_pairs(gm)
    npairs = int(i_np.shape[0])

    a_spec, b_spec = _input_specs(tm, tk, k_pad, a_resident)
    g_spec = pl.BlockSpec((tm, tm), lambda t, k, it, jt: (it[t], jt[t]))

    bf = jnp.dtype(_COMPUTE_DTYPE).itemsize
    cost = pl.CostEstimate(
        flops=2 * tm * tm * k_pad * npairs,
        transcendentals=0,
        bytes_accessed=int((m_pad if a_resident else npairs * tm) * k_pad * bf
                           + npairs * tm * k_pad * bf
                           + npairs * tm * tm * 4),
    )

    kern = functools.partial(_gram_kernel, inv_norm=1.0 / float(norm),
                             tk=tk, a_resident=a_resident)
    g_ut = pl.pallas_call(
        kern,
        out_shape=jax.ShapeDtypeStruct((m_pad, m_pad), jnp.float32),
        grid_spec=pltpu.PrefetchScalarGridSpec(
            num_scalar_prefetch=2,
            grid=(npairs, gk),
            in_specs=[a_spec, b_spec],
            out_specs=g_spec,
            scratch_shapes=[pltpu.VMEM((tm, tm), jnp.float32)],
        ),
        compiler_params=pltpu.CompilerParams(
            dimension_semantics=("parallel", "arbitrary"),
            vmem_limit_bytes=_VMEM_LIMIT_BYTES,
        ),
        cost_estimate=cost,
    )(jnp.asarray(i_np), jnp.asarray(j_np), f, f_t)

    # Only tiles with j >= i were written; mirror the upper triangle element-wise.
    rows = jnp.arange(m_pad)[:, None]
    cols = jnp.arange(m_pad)[None, :]
    g_full = jnp.where(rows <= cols, g_ut, g_ut.T)
    return g_full[:M, :M]


def gram_mse_loss(features, target_g, norm):
    """mean((gram(features)/norm - target_g)^2) with no Gram writeback to HBM."""
    M, K = features.shape
    f, m_pad, k_pad, tm, tk, gm, gk, a_resident = _prep(features)
    f_t = f.T
    tgt = _pad2d(target_g.astype(jnp.float32), m_pad, m_pad)  # zero-pad: diff is 0 there
    i_np, j_np, w_np = _tri_pairs(gm)
    npairs = int(i_np.shape[0])

    a_spec, b_spec = _input_specs(tm, tk, k_pad, a_resident)
    t_spec = pl.BlockSpec((tm, tm), lambda t, k, it, jt: (it[t], jt[t]))
    out_spec = pl.BlockSpec((1, 8, _LANE), lambda t, k, it, jt: (t, 0, 0))

    bf = jnp.dtype(_COMPUTE_DTYPE).itemsize
    cost = pl.CostEstimate(
        flops=2 * tm * tm * k_pad * npairs,
        transcendentals=0,
        bytes_accessed=int((m_pad if a_resident else npairs * tm) * k_pad * bf
                           + npairs * tm * k_pad * bf
                           + npairs * tm * tm * 4
                           + npairs * 8 * _LANE * 4),
    )

    kern = functools.partial(_gram_mse_kernel, inv_norm=1.0 / float(norm),
                             tk=tk, a_resident=a_resident)
    partials = pl.pallas_call(
        kern,
        out_shape=jax.ShapeDtypeStruct((npairs, 8, _LANE), jnp.float32),
        grid_spec=pltpu.PrefetchScalarGridSpec(
            num_scalar_prefetch=2,
            grid=(npairs, gk),
            in_specs=[a_spec, b_spec, t_spec],
            out_specs=out_spec,
            scratch_shapes=[pltpu.VMEM((tm, tm), jnp.float32)],
        ),
        compiler_params=pltpu.CompilerParams(
            dimension_semantics=("parallel", "arbitrary"),
            vmem_limit_bytes=_VMEM_LIMIT_BYTES,
        ),
        cost_estimate=cost,
    )(jnp.asarray(i_np), jnp.asarray(j_np), f, f_t, tgt)

    # Each slab carries one per-tile sum; diagonal tiles weight 1, off-diagonal 2
    # (symmetry).  Mean keeps dividing by the ORIGINAL M*M.
    weights = jnp.asarray(w_np)
    return jnp.sum(partials[:, 0, 0] * weights) / float(M * M)


class StyleLoss:
    """JAX/Pallas port of the PyTorch StyleLoss module (NHWC input)."""

    def __init__(self, target_feature):
        b, h, w, c = target_feature.shape
        norm = b * h * w * c
        feats = jnp.asarray(target_feature).reshape(b * h, w * c)
        self.target = jax.lax.stop_gradient(gram_matrix(feats, norm))  # .detach()
        # F.mse_loss(self.target, self.target) is identically zero — no kernel launch.
        self.loss = jnp.float32(0.0)

    def __call__(self, x):
        b, h, w, c = x.shape
        norm = b * h * w * c
        feats = jnp.asarray(x).reshape(b * h, w * c)
        self.loss = gram_mse_loss(feats, self.target, norm)
        return x


# ---------------------------------------------------------------------------
# Reference & tests
# ---------------------------------------------------------------------------
def _gram_ref(x):
    b, h, w, c = x.shape
    f = jnp.asarray(x, jnp.float32).reshape(b * h, w * c)
    # Match the kernel's bf16 input rounding (f32 accumulation on both paths).
    f = f.astype(_COMPUTE_DTYPE).astype(jnp.float32)
    g = jnp.matmul(f, f.T, precision=jax.lax.Precision.HIGHEST)
    return g / (b * h * w * c)


if __name__ == "__main__":
    key = jax.random.PRNGKey(0)
    keys = jax.random.split(key, 6)

    def check(target_feature, x):
        module = StyleLoss(target_feature)
        out = jax.block_until_ready(module(x))
        loss = jax.block_until_ready(module.loss)
        ref_t = _gram_ref(target_feature)
        ref_loss = jnp.mean((_gram_ref(x) - ref_t) ** 2)
        assert module.target.shape == ref_t.shape
        assert jnp.allclose(module.target, ref_t, rtol=1e-3, atol=1e-6)
        assert jnp.allclose(loss, ref_loss, rtol=2e-3, atol=1e-10), (loss, ref_loss)
        assert jnp.allclose(out, x)  # forward returns its input unchanged

    # Small NHWC: batch=2, 16x16, channels=4 -> features (32, 64), padded to (128, 128).
    check(jax.random.normal(keys[0], (2, 16, 16, 4), jnp.float32),
          jax.random.normal(keys[1], (2, 16, 16, 4), jnp.float32))

    # Non-multiple-of-128 dims -> exercises zero-padding and the K-accumulation loop.
    check(jax.random.normal(keys[2], (2, 24, 10, 30), jnp.float32),
          jax.random.normal(keys[3], (2, 24, 10, 30), jnp.float32))

    # Larger: M=512, K=1024 -> triangular tile grid (gm=2, 3 pairs), 2x off-diag weighting.
    check(jax.random.normal(keys[4], (4, 128, 16, 64), jnp.float32),
          jax.random.normal(keys[5], (4, 128, 16, 64), jnp.float32))

    print("KERNEL_OK")
</pallas_src>

<mosaic_0001>
module attributes {stable_mosaic.version = 11 : i64} {
  func.func @_gram_kernel(%arg0: i32, %arg1: i32, %arg2: memref<1xi32, #tpu.memory_space<smem>>, %arg3: memref<1xi32, #tpu.memory_space<smem>>, %arg4: memref<128x128xbf16, #tpu.memory_space<vmem>>, %arg5: memref<128x128xbf16, #tpu.memory_space<vmem>>, %arg6: memref<128x128xf32, #tpu.memory_space<vmem>>, %arg7: memref<128x128xf32, #tpu.memory_space<vmem>>) attributes {dimension_semantics = [#tpu.dimension_semantics<parallel>, #tpu.dimension_semantics<arbitrary>], iteration_bounds = array<i64: 1, 1>, scalar_prefetch = 2 : i64, scratch_operands = 1 : i64, tpu.core_type = #tpu.core_type<tc>, window_params = [{transform_indices = @transform_0, window_bounds = array<i64: 128, 128>}, {transform_indices = @transform_1, window_bounds = array<i64: 128, 128>}, {transform_indices = @transform_2, window_bounds = array<i64: 128, 128>}]} {
    %c0_i32 = arith.constant 0 : i32
    %0 = arith.cmpi eq, %arg1, %c0_i32 : i32
    %1 = arith.extui %0 : i1 to i32
    %c0_i32_0 = arith.constant 0 : i32
    %2 = arith.cmpi ne, %1, %c0_i32_0 : i32
    scf.if %2 {
      %cst_9 = arith.constant 0.000000e+00 : f32
      %15 = vector.broadcast %cst_9 : f32 to vector<128x128xf32>
      %c0_10 = arith.constant 0 : index
      %c0_11 = arith.constant 0 : index
      %16 = vector.load %arg7[%c0_10, %c0_11] : memref<128x128xf32, #tpu.memory_space<vmem>>, vector<128x128xf32>
      tpu.vector_store %arg7[%c0_10, %c0_11], %15 {strides = array<i32>} : memref<128x128xf32, #tpu.memory_space<vmem>>, vector<128x128xf32>,
    } else {
    }
    %c128_i32 = arith.constant 128 : i32
    %3 = arith.muli %arg1, %c128_i32 : i32
    %4 = tpu.assume_multiple %3, 128 : i32
    %c0 = arith.constant 0 : index
    %5 = arith.index_cast %4 : i32 to index
    %6 = vector.load %arg4[%c0, %5] : memref<128x128xbf16, #tpu.memory_space<vmem>>, vector<128x128xbf16>
    %c0_1 = arith.constant 0 : index
    %c0_2 = arith.constant 0 : index
    %7 = vector.load %arg7[%c0_1, %c0_2] : memref<128x128xf32, #tpu.memory_space<vmem>>, vector<128x128xf32>
    %c0_3 = arith.constant 0 : index
    %c0_4 = arith.constant 0 : index
    %8 = vector.load %arg5[%c0_3, %c0_4] : memref<128x128xbf16, #tpu.memory_space<vmem>>, vector<128x128xbf16>
    %cst = arith.constant dense<0.000000e+00> : vector<128x128xf32>
    %9 = tpu.matmul %6, %8, %cst {dimension_numbers = #tpu.dot_dimension_numbers<[1], [0], [0], [1], [0, 0, 1, 1], [], []>} : vector<128x128xbf16>, vector<128x128xbf16>, vector<128x128xf32> -> vector<128x128xf32>
    %10 = arith.addf %7, %9 : vector<128x128xf32>
    %c0_5 = arith.constant 0 : index
    %c0_6 = arith.constant 0 : index
    %11 = vector.load %arg7[%c0_5, %c0_6] : memref<128x128xf32, #tpu.memory_space<vmem>>, vector<128x128xf32>
    tpu.vector_store %arg7[%c0_5, %c0_6], %10 {strides = array<i32>} : memref<128x128xf32, #tpu.memory_space<vmem>>, vector<128x128xf32>,
    %c0_i32_7 = arith.constant 0 : i32
    %12 = arith.cmpi eq, %arg1, %c0_i32_7 : i32
    %13 = arith.extui %12 : i1 to i32
    %c0_i32_8 = arith.constant 0 : i32
    %14 = arith.cmpi ne, %13, %c0_i32_8 : i32
    scf.if %14 {
      %c0_9 = arith.constant 0 : index
      %c0_10 = arith.constant 0 : index
      %15 = vector.load %arg7[%c0_9, %c0_10] : memref<128x128xf32, #tpu.memory_space<vmem>>, vector<128x128xf32>
      %cst_11 = arith.constant 4.8828125E-4 : f32
      %16 = vector.broadcast %cst_11 : f32 to vector<128x128xf32>
      %17 = arith.mulf %15, %16 : vector<128x128xf32>
      %c0_12 = arith.constant 0 : index
      %c0_13 = arith.constant 0 : index
      %18 = vector.load %arg6[%c0_12, %c0_13] : memref<128x128xf32, #tpu.memory_space<vmem>>, vector<128x128xf32>
      tpu.vector_store %arg6[%c0_12, %c0_13], %17 {strides = array<i32>} : memref<128x128xf32, #tpu.memory_space<vmem>>, vector<128x128xf32>,
    } else {
    }
    return
  }
  func.func @transform_0(%arg0: i32, %arg1: i32, %arg2: memref<1xi32, #tpu.memory_space<smem>>, %arg3: memref<1xi32, #tpu.memory_space<smem>>) -> (i32, i32) {
    %0 = arith.index_cast %arg0 : i32 to index
    %1 = memref.load %arg2[%0] : memref<1xi32, #tpu.memory_space<smem>>
    %c0_i32 = arith.constant 0 : i32
    %c0_i32_0 = arith.constant 0 : i32
    return %1, %c0_i32 : i32, i32
  }
  func.func @transform_1(%arg0: i32, %arg1: i32, %arg2: memref<1xi32, #tpu.memory_space<smem>>, %arg3: memref<1xi32, #tpu.memory_space<smem>>) -> (i32, i32) {
    %0 = arith.index_cast %arg0 : i32 to index
    %1 = memref.load %arg3[%0] : memref<1xi32, #tpu.memory_space<smem>>
    %c0_i32 = arith.constant 0 : i32
    return %arg1, %1 : i32, i32
  }
  func.func @transform_2(%arg0: i32, %arg1: i32, %arg2: memref<1xi32, #tpu.memory_space<smem>>, %arg3: memref<1xi32, #tpu.memory_space<smem>>) -> (i32, i32) {
    %0 = arith.index_cast %arg0 : i32 to index
    %1 = memref.load %arg2[%0] : memref<1xi32, #tpu.memory_space<smem>>
    %2 = arith.index_cast %arg0 : i32 to index
    %3 = memref.load %arg3[%2] : memref<1xi32, #tpu.memory_space<smem>>
    %c0_i32 = arith.constant 0 : i32
    return %1, %3 : i32, i32
  }
}

</mosaic_0001>

<bundles_post_ra>
// kernel: tpu_custom_call.1
= control target key start
LH: loop header
LB: loop body
LE: loop exit
PB: predicated region body
PF: predicated region fallthrough
CT: control target
= control target key end

     0   :  { %11 = vsyncpa [#allocation7], 0  ;;  %s693_s0 = inlined_call_operand.<no memory space> [shape: s32[1], index: 0, kind: input, shape index: {}]   ;;  %s694_s1 = inlined_call_operand.<no memory space> [shape: s32[1], index: 1, kind: input, shape index: {}]   ;;  %s695_s2 = inlined_call_operand.hbm [shape: bf16[128,128], index: 2, kind: input, shape index: {}]   ;;  %s696_s3 = inlined_call_operand.hbm [shape: bf16[128,128], index: 3, kind: input, shape index: {}]   ;;  %s697_s4 = inlined_call_operand.hbm [shape: f32[128,128], index: 4, kind: output, shape index: {}]  }
   0x1   :  { %12 = vsyncpa [#allocation10], 0 }
   0x2   :  { %13 = vsyncpa [#allocation8], 0  ;;  %s462_s17 = sshll.u32 %s693_s0, 10  ;;  %s622_s21 = smov [#allocation6]  }
   0x3   :  { %s22_s20 = scalar_lea.hbm %s695_s2, %s462_s17  ;;  %s23_s22 = sshll.u32 %s622_s21, 4  ;;  %s24_s22 = int_to_ptr.vmem [resolvable:$true] %s23_s22 }
   0x4   :  { %s443_s25 = sshll.u32 %s694_s1, 6  ;;  %s550_s26 = scalar_lea.hbm %s22_s20, 1024 }
   0x5   :  { %p551_p0 = scmp.ne.s32.totalorder %s22_s20, %s550_s26  ;;  %s552_s29 = scalar_lea.hbm %s695_s2, 1024 }
   0x6   :  { %p553_p1 = scmp.lt.s32.totalorder %s22_s20, %s695_s2  ;;  %p554_p2 = scmp.lt.s32.totalorder %s552_s29, %s550_s26 }
   0x8   :  { %p555_p3 = por %p554_p2, %p553_p1 }
   0xa   :  { %p556_p4 = pnand %p555_p3, %p551_p0 }
   0xc   :  { %559 = shalt.err (!%p556_p4)
}
   0xd   :  { %s560_s6 = scalar_lea.vmem %s24_s22, 1024  ;;  %p565_p6 = scmp.lt.s32.totalorder %s24_s22, %s24_s22 }
   0xe   :  { %p561_p5 = scmp.ne.s32.totalorder %s24_s22, %s560_s6  ;;  %p566_p7 = scmp.lt.s32.totalorder %s560_s6, %s560_s6 }
  0x10   :  { %p567_p8 = por %p566_p7, %p565_p6 }
  0x12   :  { %p568_p9 = pnand %p567_p8, %p561_p5 }
  0x14   :  { %571 = shalt.err (!%p568_p9)
}
  0x15   :  { %s623_s7 = smov 64   ;;  %s624_s8 = smov 4  }
  0x16   :  { %29 = dma.hbm_to_vmem [thread:$0]  %s22_s20, 1024, %s24_s22, [#allocation7], %s623_s7, %s623_s7, %s624_s8  }
  0x17   :  { %s37_s11 = scalar_lea.hbm %s696_s3, %s443_s25  ;;  %s625_s12 = smov [#allocation9]  }
  0x18   :  { %s38_s2 = sshll.u32 %s625_s12, 4  ;;  %s572_s13 = scalar_lea.hbm %s37_s11, 1024  ;;  %s39_s2 = int_to_ptr.vmem [resolvable:$true] %s38_s2 }
  0x19   :  { %p573_p10 = scmp.ne.s32.totalorder %s37_s11, %s572_s13  ;;  %s574_s16 = scalar_lea.hbm %s696_s3, 1024 }
  0x1a   :  { %p575_p11 = scmp.lt.s32.totalorder %s37_s11, %s696_s3  ;;  %p576_p12 = scmp.lt.s32.totalorder %s574_s16, %s572_s13 }
  0x1c   :  { %p577_p13 = por %p576_p12, %p575_p11 }
  0x1e   :  { %p578_p0 = pnand %p577_p13, %p573_p10 }
  0x20   :  { %581 = shalt.err (!%p578_p0)
}
  0x21   :  { %s582_s19 = scalar_lea.vmem %s39_s2, 1024  ;;  %p587_p2 = scmp.lt.s32.totalorder %s39_s2, %s39_s2 }
  0x22   :  { %p583_p1 = scmp.ne.s32.totalorder %s39_s2, %s582_s19  ;;  %p588_p3 = scmp.lt.s32.totalorder %s582_s19, %s582_s19 }
  0x24   :  { %p589_p4 = por %p588_p3, %p587_p2 }
  0x26   :  { %p590_p5 = pnand %p589_p4, %p583_p1 }
  0x28   :  { %593 = shalt.err (!%p590_p5)
}
  0x29   :  { %44 = dma.hbm_to_vmem [thread:$0]  %s37_s11, 1024, %s39_s2, [#allocation10], %s623_s7, %s623_s7, %s624_s8  }
  0x2a   :  { %616 = dma.done.wait [#allocation7], 1024  }
  0x2b   :  { %617 = vsyncadd [#allocation7], 4294966272 }
  0x2c   :  { %618 = dma.done.wait [#allocation10], 1024  }
  0x2d   :  { %619 = vsyncadd [#allocation10], 4294966272  ;;  %v534_v0 = vld [vmem:[#allocation9 + $0x38] sm:$0xff]   ;;  %v535_v1 = vld [vmem:[#allocation9 + $0x30] sm:$0xff]   ;;  %s460_s21 = sshll.u32 %s693_s0, 4  ;;  %s626_s25 = smov [#allocation11]  }
  0x2e   :  { %479 = vmatprep.subr.bf16.mxu0 %v534_v0  ;;  %511 = vmatprep.subr.bf16.mxu1 %v534_v0  ;;  %v536_v2 = vld [vmem:[#allocation9 + $0x28] sm:$0xff]   ;;  %v537_v3 = vld [vmem:[#allocation9 + $0x20] sm:$0xff]   ;;  %v538_v6 = vld [vmem:[#allocation9 + $0x18] sm:$0xff]   ;;  %s415_s24 = sadd.s32 %s460_s21, %s694_s1  ;;  %s418_s26 = sshll.u32 %s626_s25, 4  ;;  %s419_s26 = int_to_ptr.vmem [resolvable:$true] %s418_s26 }
  0x2f   :  { %480 = vmatpush3.bf16.msra.mxu0 %v534_v0  ;;  %519 = vmatpush3.bf16.msra.mxu1 %v534_v0  ;;  %v542_v4 = vld [vmem:[#allocation6] sm:$0xff]   ;;  %v539_v7 = vld [vmem:[#allocation9 + $0x10] sm:$0xff]   ;;  %v540_v8 = vld [vmem:[#allocation9 + $0x8] sm:$0xff]   ;;  %s461_s0 = sshll.u32 %s415_s24, 7  ;;  %s594_s29 = scalar_lea.vmem %s419_s26, 2048 }
  0x30   :  { %481 = vmatprep.subr.bf16.mxu0 %v535_v1  ;;  %512 = vmatprep.subr.bf16.mxu1 %v535_v1  ;;  %v543_v5 = vld [vmem:[#allocation6 + $0x20] sm:$0xff]   ;;  %v544_v10 = vld [vmem:[#allocation6 + $0x8] sm:$0xff]   ;;  %v546_v12 = vld [vmem:[#allocation6 + $0x10] sm:$0xff]   ;;  %s417_s28 = scalar_lea.hbm %s697_s4, %s461_s0  ;;  %p595_p6 = scmp.ne.s32.totalorder %s419_s26, %s594_s29 }
  0x31   :  { %495 = vmatprep.mubr.bf16.mxu0 %v542_v4  ;;  %503 = vmatprep.mubr.bf16.mxu1 %v543_v5  ;;  %v541_v9 = vld [vmem:[#allocation9] sm:$0xff]   ;;  %v545_v11 = vld [vmem:[#allocation6 + $0x28] sm:$0xff]   ;;  %v547_v13 = vld [vmem:[#allocation6 + $0x30] sm:$0xff]   ;;  %p599_p7 = scmp.lt.s32.totalorder %s419_s26, %s419_s26  ;;  %p600_p8 = scmp.lt.s32.totalorder %s594_s29, %s594_s29 }
  0x32   :  { %v548_v14 = vld [vmem:[#allocation6 + $0x18] sm:$0xff]  }
  0x33   :  { %482 = vmatpush3.bf16.msra.mxu0 %v535_v1  ;;  %520 = vmatpush3.bf16.msra.mxu1 %v535_v1  ;;  %v549_v15 = vld [vmem:[#allocation6 + $0x38] sm:$0xff]   ;;  %p601_p9 = por %p600_p8, %p599_p7 }
  0x34   :  { %483 = vmatprep.subr.bf16.mxu0 %v536_v2  ;;  %513 = vmatprep.subr.bf16.mxu1 %v536_v2 }
  0x35   :  { %p602_p10 = pnand %p601_p9, %p595_p6 }
  0x37   :  { %484 = vmatpush3.bf16.msra.mxu0 %v536_v2  ;;  %521 = vmatpush3.bf16.msra.mxu1 %v536_v2 }
  0x38   :  { %485 = vmatprep.subr.bf16.mxu0 %v537_v3  ;;  %514 = vmatprep.subr.bf16.mxu1 %v537_v3 }
  0x3b   :  { %486 = vmatpush3.bf16.msra.mxu0 %v537_v3  ;;  %522 = vmatpush3.bf16.msra.mxu1 %v537_v3 }
  0x3c   :  { %487 = vmatprep.subr.bf16.mxu0 %v538_v6  ;;  %515 = vmatprep.subr.bf16.mxu1 %v538_v6 }
  0x3f   :  { %488 = vmatpush3.bf16.msra.mxu0 %v538_v6  ;;  %523 = vmatpush3.bf16.msra.mxu1 %v538_v6 }
  0x40   :  { %489 = vmatprep.subr.bf16.mxu0 %v539_v7  ;;  %516 = vmatprep.subr.bf16.mxu1 %v539_v7 }
  0x43   :  { %490 = vmatpush3.bf16.msra.mxu0 %v539_v7  ;;  %524 = vmatpush3.bf16.msra.mxu1 %v539_v7 }
  0x44   :  { %491 = vmatprep.subr.bf16.mxu0 %v540_v8  ;;  %517 = vmatprep.subr.bf16.mxu1 %v540_v8 }
  0x47   :  { %492 = vmatpush3.bf16.msra.mxu0 %v540_v8  ;;  %525 = vmatpush3.bf16.msra.mxu1 %v540_v8 }
  0x48   :  { %493 = vmatprep.subr.bf16.mxu0 %v541_v9  ;;  %518 = vmatprep.subr.bf16.mxu1 %v541_v9 }
  0x4b   :  { %494 = vmatpush3.bf16.msra.mxu0 %v541_v9  ;;  %526 = vmatpush3.bf16.msra.mxu1 %v541_v9 }
  0x4e   :  { %496 = vmatmul.mubr.bf16.vlgmr.msra.gmra.mxu0 %v544_v10  ;;  %504 = vmatmul.mubr.bf16.vlgmr.msra.gmra.mxu1 %v545_v11 }
  0x4f   :  { %499 = vmatprep.mubr.bf16.mxu0 %v546_v12  ;;  %507 = vmatprep.mubr.bf16.mxu1 %v547_v13 }
  0x56   :  { %500 = vmatmul.mubr.bf16.gmra.mxu0 %v548_v14  ;;  %508 = vmatmul.mubr.bf16.gmra.mxu1 %v549_v15 }
 0x10e   :  { %v497_v16 = vpop.f32.mrf.mxu0  ;;  %v505_v17 = vpop.f32.mrf.mxu1 }
 0x10f   :  { %v377_v18 = vmul.f32 0.00048828125, %v497_v16  ;;  %v385_v19 = vmul.f32 0.00048828125, %v505_v17 }
 0x110   :  { %v261_v20 = vpop.f32.mrf.mxu0  ;;  %v293_v21 = vpop.f32.mrf.mxu1 }
 0x111   :  { %393 = vst [vmem:[#allocation11 + $0x10] sm:$0xff] %v377_v18  ;;  %401 = vst [vmem:[#allocation11 + $0x50] sm:$0xff] %v385_v19  ;;  %v375_v22 = vmul.f32 0.00048828125, %v261_v20  ;;  %v383_v23 = vmul.f32 0.00048828125, %v293_v21 }
 0x112   :  { %v498_v24 = vpop.f32.mrf.mxu0  ;;  %v506_v25 = vpop.f32.mrf.mxu1 }
 0x113   :  { %391 = vst [vmem:[#allocation11] sm:$0xff] %v375_v22  ;;  %399 = vst [vmem:[#allocation11 + $0x40] sm:$0xff] %v383_v23  ;;  %v378_v26 = vmul.f32 0.00048828125, %v498_v24  ;;  %v386_v27 = vmul.f32 0.00048828125, %v506_v25 }
 0x114   :  { %v264_v28 = vpop.f32.mrf.mxu0  ;;  %v296_v29 = vpop.f32.mrf.mxu1 }
 0x115   :  { %394 = vst [vmem:[#allocation11 + $0x18] sm:$0xff] %v378_v26  ;;  %402 = vst [vmem:[#allocation11 + $0x58] sm:$0xff] %v386_v27  ;;  %v376_v30 = vmul.f32 0.00048828125, %v264_v28  ;;  %v384_v31 = vmul.f32 0.00048828125, %v296_v29 }
 0x116   :  { %v501_v32 = vpop.f32.mrf.mxu0  ;;  %v509_v33 = vpop.f32.mrf.mxu1 }
 0x117   :  { %392 = vst [vmem:[#allocation11 + $0x8] sm:$0xff] %v376_v30  ;;  %400 = vst [vmem:[#allocation11 + $0x48] sm:$0xff] %v384_v31  ;;  %v381_v34 = vmul.f32 0.00048828125, %v501_v32  ;;  %v389_v35 = vmul.f32 0.00048828125, %v509_v33 }
 0x118   :  { %v277_v36 = vpop.f32.mrf.mxu0  ;;  %v309_v37 = vpop.f32.mrf.mxu1 }
 0x119   :  { %397 = vst [vmem:[#allocation11 + $0x30] sm:$0xff] %v381_v34  ;;  %405 = vst [vmem:[#allocation11 + $0x70] sm:$0xff] %v389_v35  ;;  %v379_v38 = vmul.f32 0.00048828125, %v277_v36  ;;  %v387_v39 = vmul.f32 0.00048828125, %v309_v37 }
 0x11a   :  { %v502_v40 = vpop.f32.mrf.mxu0  ;;  %v510_v41 = vpop.f32.mrf.mxu1 }
 0x11b   :  { %395 = vst [vmem:[#allocation11 + $0x20] sm:$0xff] %v379_v38  ;;  %403 = vst [vmem:[#allocation11 + $0x60] sm:$0xff] %v387_v39  ;;  %v382_v42 = vmul.f32 0.00048828125, %v502_v40  ;;  %v390_v43 = vmul.f32 0.00048828125, %v510_v41 }
 0x11c   :  { %v280_v44 = vpop.f32.mrf.mxu0  ;;  %v312_v45 = vpop.f32.mrf.mxu1 }
 0x11d   :  { %398 = vst [vmem:[#allocation11 + $0x38] sm:$0xff] %v382_v42  ;;  %406 = vst [vmem:[#allocation11 + $0x78] sm:$0xff] %v390_v43  ;;  %v380_v46 = vmul.f32 0.00048828125, %v280_v44  ;;  %v388_v47 = vmul.f32 0.00048828125, %v312_v45 }
 0x11f   :  { %396 = vst [vmem:[#allocation11 + $0x28] sm:$0xff] %v380_v46  ;;  %404 = vst [vmem:[#allocation11 + $0x68] sm:$0xff] %v388_v47 }
 0x120   :  { %605 = shalt.err (!%p602_p10)
}
 0x121   :  { %s606_s30 = scalar_lea.hbm %s417_s28, 2048  ;;  %s608_s7 = scalar_lea.hbm %s697_s4, 2048 }
 0x122   :  { %p607_p11 = scmp.ne.s32.totalorder %s417_s28, %s606_s30  ;;  %p609_p12 = scmp.lt.s32.totalorder %s417_s28, %s697_s4 }
 0x123   :  { %p610_p13 = scmp.lt.s32.totalorder %s608_s7, %s606_s30 }
 0x125   :  { %p611_p0 = por %p610_p13, %p609_p12 }
 0x127   :  { %p612_p1 = pnand %p611_p0, %p607_p11 }
 0x129   :  { %615 = shalt.err (!%p612_p1)
}
 0x12a   :  { %s627_s10 = smov 128   ;;  %s628_s11 = smov 8  }
 0x12b   :  { %424 = dma.vmem_to_hbm [thread:$0]  %s419_s26, 2048, %s417_s28, [#allocation8], %s627_s10, %s627_s10, %s628_s11  }
 0x12c   :  { %620 = dma.done.wait [#allocation8], 2048  }
 0x12d   :  { %621 = vsyncadd [#allocation8], 4294965248 }
 0x12e   :  { %428 = vsyncpa [#allocation7], 1 }
 0x12f   :  { %429 = vsyncpa [#allocation10], 1 }
 0x130   :  { %430 = vsyncpa [#allocation8], 1 }

</bundles_post_ra>
